<compile_context>
chip_gen: v7x
topology: tpu7x:2x2x1
jax: 0.10.0
libtpu: 0.0.40
codegen_flags: <defaults>
</compile_context>

<pallas_src>
import functools

import jax
import jax.numpy as jnp
from jax.experimental import pallas as pl
from jax.experimental.pallas import tpu as pltpu


def _round_up(v, m):
    return (v + m - 1) // m * m


def _dcn_kernel(x_ref, w_ref, b_ref, gamma_ref, beta_ref, o_ref, c_scr,
                *, n_out, t_out, t_out_p, ksize, dilation, stride, groups,
                ci_g_p, co_g):
    """One batch element: dilated conv1d (single im2col dot) + GlobLN.

    x_ref:     (1, nIn_p, T_in_p)        padded input (channels & lanes padded)
    w_ref:     (nOut_p, K*ci_g_p)        im2col-flattened conv weight
    b_ref:     (nOut_p, 1)               conv bias   (zero-padded rows)
    gamma_ref: (nOut_p, 1)               LN gain     (zero-padded rows)
    beta_ref:  (nOut_p, 1)               LN bias     (zero-padded rows)
    o_ref:     (1, nOut_p, t_out_p)      lane-dense output
    c_scr:     (nOut_p, t_out_p) f32     VMEM scratch (used only for groups>1)
    """
    x = x_ref[0]                       # (nIn_p, T_in_p)
    w = w_ref[...]                     # (nOut_p, K*ci_g_p)
    bias = b_ref[...]                  # (nOut_p, 1)
    t_in_p = x.shape[1]

    # ---- build the K shifted tap views once (XLU roll, stride == 1 path) ----
    taps = []
    for k in range(ksize):
        if stride == 1:
            shift = (t_in_p - k * dilation) % t_in_p   # == roll by -k*dilation
            xk = pltpu.roll(x, shift, axis=1) if shift else x
            taps.append(xk[:, :t_out_p])
        else:
            # TODO(synk): stride>1 keeps a strided lane slice in-kernel; for
            # large shapes pre-stride in the wrapper / via the BlockSpec DMA.
            taps.append(jax.lax.slice(
                x, (0, k * dilation),
                (x.shape[0], k * dilation + (t_out_p - 1) * stride + 1),
                (1, stride)))

    # ---- one MXU contraction over (ci_g * K) instead of K skinny dots ------
    if groups == 1:
        lhs = jnp.concatenate(taps, axis=0)            # (K*ci_g_p, t_out_p)
        c = jnp.dot(w, lhs, preferred_element_type=jnp.float32)
    else:
        for g in range(groups):
            lhs_g = jnp.concatenate(
                [t[g * ci_g_p:(g + 1) * ci_g_p] for t in taps], axis=0)
            wg = w[g * co_g:(g + 1) * co_g]
            c_scr[g * co_g:(g + 1) * co_g, :] = jnp.dot(
                wg, lhs_g, preferred_element_type=jnp.float32)
        c = c_scr[...]                                  # (nOut_p, t_out_p)

    # ---- single-pass GlobLN stats; conv bias folded into the affine --------
    if t_out != t_out_p:
        col = jax.lax.broadcasted_iota(jnp.int32, (1, t_out_p), 1)
        cm = jnp.where(col < t_out, c, 0.0)            # mask padded columns
    else:
        cm = c

    r = jnp.sum(cm, axis=1, keepdims=True)             # per-channel sums
    s1 = jnp.sum(r)                                    # sum(conv)
    s2 = jnp.sum(cm * cm)                              # sum(conv^2)
    sum_b = jnp.sum(bias)
    sum_b2 = jnp.sum(bias * bias)
    cross = jnp.sum(bias * r)                          # sum_i b_i * rowsum_i

    n_elems = float(n_out * t_out)                     # true element count
    mean = (s1 + t_out * sum_b) / n_elems
    var = (s2 + 2.0 * cross + t_out * sum_b2) / n_elems - mean * mean
    inv = jax.lax.rsqrt(var + 1e-8)                    # EUP

    scale = gamma_ref[...] * inv                       # (nOut_p, 1)
    shift = beta_ref[...] + scale * (bias - mean)      # (nOut_p, 1)
    o_ref[0] = (c * scale + shift).astype(o_ref.dtype)


def dilated_conv_norm(x, weight, bias, gamma, beta, *,
                      ksize, stride=1, dilation=1, groups=1,
                      compute_dtype=jnp.float32):
    """x: (B, nIn, T) float32. Returns (B, nOut, T_out).

    compute_dtype: dtype of x/weight fed to the MXU (use jnp.bfloat16 on
    v6e/v7x for 2x conv throughput; accumulation and LN stay f32).
    """
    B, n_in, T = x.shape
    n_out = weight.shape[0]
    ci_g = n_in // groups
    pad = (ksize - 1) // 2 * dilation
    t_conv = T + 2 * pad
    t_out = (t_conv - dilation * (ksize - 1) - 1) // stride + 1

    # Lane-dense / sublane-aligned padding.
    t_out_p = _round_up(t_out, 128)
    if groups == 1:
        n_in_p = _round_up(n_in, 8)
        n_out_p = _round_up(n_out, 8)
        ci_g_p = n_in_p
    else:
        n_in_p, n_out_p, ci_g_p = n_in, n_out, ci_g
    co_g = n_out_p if groups == 1 else n_out // groups

    t_in_needed = (ksize - 1) * dilation + (t_out_p - 1) * stride + 1
    t_in_p = _round_up(max(t_in_needed, t_conv), 128)

    # Input: conv left-pad, zero-fill right to t_in_p, zero-pad channels.
    x_in = jnp.pad(x, ((0, 0), (0, n_in_p - n_in),
                       (pad, t_in_p - T - pad))).astype(compute_dtype)

    # Weight -> im2col layout (nOut_p, K*ci_g_p), column index = k*ci_g_p + ci.
    w_p = jnp.pad(weight, ((0, n_out_p - n_out), (0, ci_g_p - ci_g), (0, 0)))
    w_flat = jnp.transpose(w_p, (0, 2, 1)).reshape(
        n_out_p, ksize * ci_g_p).astype(compute_dtype)

    b2 = jnp.pad(bias.astype(jnp.float32),
                 (0, n_out_p - n_out)).reshape(n_out_p, 1)
    g2 = jnp.pad(gamma.astype(jnp.float32),
                 (0, n_out_p - n_out)).reshape(n_out_p, 1)
    be2 = jnp.pad(beta.astype(jnp.float32),
                  (0, n_out_p - n_out)).reshape(n_out_p, 1)

    kernel = functools.partial(
        _dcn_kernel,
        n_out=n_out, t_out=t_out, t_out_p=t_out_p, ksize=ksize,
        dilation=dilation, stride=stride, groups=groups,
        ci_g_p=ci_g_p, co_g=co_g)

    # Explicit VMEM budget: double-buffered x/out blocks + weights/params +
    # im2col LHS + scratch + margin.
    in_bytes = jnp.dtype(compute_dtype).itemsize
    x_blk = n_in_p * t_in_p * in_bytes
    out_blk = n_out_p * t_out_p * 4
    w_bytes = n_out_p * ksize * ci_g_p * in_bytes
    col_bytes = ksize * n_in_p * t_out_p * in_bytes
    params = 3 * n_out_p * 128 * 4
    scratch = n_out_p * t_out_p * 4
    vmem_budget = 2 * (x_blk + out_blk) + w_bytes + col_bytes + params + scratch
    vmem_budget = int(min(max(vmem_budget + (4 << 20), 8 << 20), 100 << 20))

    out = pl.pallas_call(
        kernel,
        out_shape=jax.ShapeDtypeStruct((B, n_out_p, t_out_p), jnp.float32),
        grid_spec=pltpu.PrefetchScalarGridSpec(
            num_scalar_prefetch=0,
            grid=(B,),
            in_specs=[
                pl.BlockSpec((1, n_in_p, t_in_p), lambda b: (b, 0, 0)),
                pl.BlockSpec((n_out_p, ksize * ci_g_p), lambda b: (0, 0)),
                pl.BlockSpec((n_out_p, 1), lambda b: (0, 0)),
                pl.BlockSpec((n_out_p, 1), lambda b: (0, 0)),
                pl.BlockSpec((n_out_p, 1), lambda b: (0, 0)),
            ],
            out_specs=pl.BlockSpec((1, n_out_p, t_out_p), lambda b: (b, 0, 0)),
            scratch_shapes=[pltpu.VMEM((n_out_p, t_out_p), jnp.float32)],
        ),
        compiler_params=pltpu.CompilerParams(
            dimension_semantics=("parallel",),
            vmem_limit_bytes=vmem_budget),
    )(x_in, w_flat, b2, g2, be2)

    # Drop channel/time padding.
    return out[:, :n_out, :t_out]


def _reference(x, weight, bias, gamma, beta, *, stride, dilation, groups, ksize):
    """Pure-JAX reference matching torch Conv1d + GlobLN semantics."""
    pad = (ksize - 1) // 2 * dilation
    y = jax.lax.conv_general_dilated(
        x, weight,
        window_strides=(stride,),
        padding=[(pad, pad)],
        rhs_dilation=(dilation,),
        dimension_numbers=("NCH", "OIH", "NCH"),
        feature_group_count=groups,
    ) + bias[None, :, None]
    mean = jnp.mean(y, axis=(1, 2), keepdims=True)
    var = jnp.mean((y - mean) ** 2, axis=(1, 2), keepdims=True)
    normed = (y - mean) / jnp.sqrt(var + 1e-8)
    return gamma[None, :, None] * normed + beta[None, :, None]


if __name__ == "__main__":
    # DilatedConvNorm(nIn=4, nOut=8, kSize=5, stride=1, d=2, groups=1) applied
    # to x of shape (B=2, nIn=4, T=16).
    B, n_in, n_out, T = 2, 4, 8, 16
    ksize, stride, dilation, groups = 5, 1, 2, 1

    key = jax.random.PRNGKey(0)
    kx, kw, kb = jax.random.split(key, 3)
    x = jax.random.normal(kx, (B, n_in, T), dtype=jnp.float32)
    weight = jax.random.normal(kw, (n_out, n_in // groups, ksize),
                               dtype=jnp.float32) * 0.1
    bias = jax.random.normal(kb, (n_out,), dtype=jnp.float32) * 0.1
    gamma = jnp.ones((n_out,), dtype=jnp.float32)
    beta = jnp.zeros((n_out,), dtype=jnp.float32)

    out = dilated_conv_norm(x, weight, bias, gamma, beta,
                            ksize=ksize, stride=stride,
                            dilation=dilation, groups=groups)
    out = jax.block_until_ready(out)

    ref = _reference(x, weight, bias, gamma, beta,
                     stride=stride, dilation=dilation,
                     groups=groups, ksize=ksize)
    assert out.shape == ref.shape, (out.shape, ref.shape)
    assert jnp.allclose(out, ref, atol=1e-4, rtol=1e-4), (
        float(jnp.max(jnp.abs(out - ref))))
    print("KERNEL_OK")
</pallas_src>

<mosaic_0001>
module attributes {stable_mosaic.version = 11 : i64} {
  func.func @_dcn_kernel(%arg0: i32, %arg1: memref<1x8x256xf32, #tpu.memory_space<vmem>>, %arg2: memref<8x40xf32, #tpu.memory_space<vmem>>, %arg3: memref<8x1xf32, #tpu.memory_space<vmem>>, %arg4: memref<8x1xf32, #tpu.memory_space<vmem>>, %arg5: memref<8x1xf32, #tpu.memory_space<vmem>>, %arg6: memref<1x8x128xf32, #tpu.memory_space<vmem>>, %arg7: memref<8x128xf32, #tpu.memory_space<vmem>>) attributes {dimension_semantics = [#tpu.dimension_semantics<parallel>], iteration_bounds = array<i64: 2>, scalar_prefetch = 0 : i64, scratch_operands = 1 : i64, tpu.core_type = #tpu.core_type<tc>, window_params = [{transform_indices = @transform_0, window_bounds = array<i64: 1, 8, 256>}, {pipeline_mode = #tpu.pipeline_mode<synchronous>, transform_indices = @transform_1, window_bounds = array<i64: 8, 40>}, {pipeline_mode = #tpu.pipeline_mode<synchronous>, transform_indices = @transform_2, window_bounds = array<i64: 8, 1>}, {pipeline_mode = #tpu.pipeline_mode<synchronous>, transform_indices = @transform_3, window_bounds = array<i64: 8, 1>}, {pipeline_mode = #tpu.pipeline_mode<synchronous>, transform_indices = @transform_4, window_bounds = array<i64: 8, 1>}, {transform_indices = @transform_5, window_bounds = array<i64: 1, 8, 128>}]} {
    %c0 = arith.constant 0 : index
    %c0_0 = arith.constant 0 : index
    %c0_1 = arith.constant 0 : index
    %0 = vector.load %arg1[%c0, %c0_0, %c0_1] : memref<1x8x256xf32, #tpu.memory_space<vmem>>, vector<1x8x256xf32>
    %1 = vector.shape_cast %0 : vector<1x8x256xf32> to vector<8x256xf32>
    %c0_2 = arith.constant 0 : index
    %c0_3 = arith.constant 0 : index
    %2 = vector.load %arg2[%c0_2, %c0_3] : memref<8x40xf32, #tpu.memory_space<vmem>>, vector<8x40xf32>
    %c0_4 = arith.constant 0 : index
    %c0_5 = arith.constant 0 : index
    %3 = vector.load %arg3[%c0_4, %c0_5] : memref<8x1xf32, #tpu.memory_space<vmem>>, vector<8x1xf32>
    %4 = vector.extract_strided_slice %1 {offsets = [0, 0], sizes = [8, 128], strides = [1, 1]} : vector<8x256xf32> to vector<8x128xf32>
    %c254_i32 = arith.constant 254 : i32
    %5 = tpu.dynamic_rotate %1 by %c254_i32 dim 1 : vector<8x256xf32>, i32 -> vector<8x256xf32>
    %6 = vector.extract_strided_slice %5 {offsets = [0, 0], sizes = [8, 128], strides = [1, 1]} : vector<8x256xf32> to vector<8x128xf32>
    %c252_i32 = arith.constant 252 : i32
    %7 = tpu.dynamic_rotate %1 by %c252_i32 dim 1 : vector<8x256xf32>, i32 -> vector<8x256xf32>
    %8 = vector.extract_strided_slice %7 {offsets = [0, 0], sizes = [8, 128], strides = [1, 1]} : vector<8x256xf32> to vector<8x128xf32>
    %c250_i32 = arith.constant 250 : i32
    %9 = tpu.dynamic_rotate %1 by %c250_i32 dim 1 : vector<8x256xf32>, i32 -> vector<8x256xf32>
    %10 = vector.extract_strided_slice %9 {offsets = [0, 0], sizes = [8, 128], strides = [1, 1]} : vector<8x256xf32> to vector<8x128xf32>
    %c248_i32 = arith.constant 248 : i32
    %11 = tpu.dynamic_rotate %1 by %c248_i32 dim 1 : vector<8x256xf32>, i32 -> vector<8x256xf32>
    %12 = vector.extract_strided_slice %11 {offsets = [0, 0], sizes = [8, 128], strides = [1, 1]} : vector<8x256xf32> to vector<8x128xf32>
    %13 = tpu.concatenate %4, %6, %8, %10, %12 in 0 : vector<8x128xf32>, vector<8x128xf32>, vector<8x128xf32>, vector<8x128xf32>, vector<8x128xf32> -> vector<40x128xf32>
    %cst = arith.constant dense<0.000000e+00> : vector<8x128xf32>
    %14 = tpu.matmul %2, %13, %cst {dimension_numbers = #tpu.dot_dimension_numbers<[1], [0], [0], [1], [0, 0, 1, 1], [], []>} : vector<8x40xf32>, vector<40x128xf32>, vector<8x128xf32> -> vector<8x128xf32>
    %15 = tpu.iota {dimensions = array<i32: 1>} : vector<1x128xi32>
    %c16_i32 = arith.constant 16 : i32
    %16 = vector.broadcast %c16_i32 : i32 to vector<1x128xi32>
    %17 = arith.cmpi slt, %15, %16 : vector<1x128xi32>
    %cst_6 = arith.constant 0.000000e+00 : f32
    %18 = vector.shape_cast %17 : vector<1x128xi1> to vector<1x128xi1>
    %19 = vector.broadcast %18 : vector<1x128xi1> to vector<8x128xi1>
    %20 = vector.broadcast %cst_6 : f32 to vector<8x128xf32>
    %21 = arith.select %19, %14, %20 : vector<8x128xi1>, vector<8x128xf32>
    %cst_7 = arith.constant dense<0.000000e+00> : vector<8xf32>
    %22 = vector.multi_reduction <add>, %21, %cst_7 [1] : vector<8x128xf32> to vector<8xf32>
    %23 = vector.shape_cast %22 : vector<8xf32> to vector<8x1xf32>
    %24 = vector.shape_cast %23 : vector<8x1xf32> to vector<1x8x1xf32>
    %cst_8 = arith.constant dense<0.000000e+00> : vector<1xf32>
    %25 = vector.multi_reduction <add>, %24, %cst_8 [1, 2] : vector<1x8x1xf32> to vector<1xf32>
    %26 = vector.shape_cast %25 : vector<1xf32> to vector<1x1x1xf32>
    %27 = vector.extract %26[0, 0, 0] : f32 from vector<1x1x1xf32>
    %28 = arith.mulf %21, %21 : vector<8x128xf32>
    %29 = vector.shape_cast %28 : vector<8x128xf32> to vector<1x8x128xf32>
    %cst_9 = arith.constant dense<0.000000e+00> : vector<1xf32>
    %30 = vector.multi_reduction <add>, %29, %cst_9 [1, 2] : vector<1x8x128xf32> to vector<1xf32>
    %31 = vector.shape_cast %30 : vector<1xf32> to vector<1x1x1xf32>
    %32 = vector.extract %31[0, 0, 0] : f32 from vector<1x1x1xf32>
    %33 = vector.shape_cast %3 : vector<8x1xf32> to vector<1x8x1xf32>
    %cst_10 = arith.constant dense<0.000000e+00> : vector<1xf32>
    %34 = vector.multi_reduction <add>, %33, %cst_10 [1, 2] : vector<1x8x1xf32> to vector<1xf32>
    %35 = vector.shape_cast %34 : vector<1xf32> to vector<1x1x1xf32>
    %36 = vector.extract %35[0, 0, 0] : f32 from vector<1x1x1xf32>
    %37 = arith.mulf %3, %3 : vector<8x1xf32>
    %38 = vector.shape_cast %37 : vector<8x1xf32> to vector<1x8x1xf32>
    %cst_11 = arith.constant dense<0.000000e+00> : vector<1xf32>
    %39 = vector.multi_reduction <add>, %38, %cst_11 [1, 2] : vector<1x8x1xf32> to vector<1xf32>
    %40 = vector.shape_cast %39 : vector<1xf32> to vector<1x1x1xf32>
    %41 = vector.extract %40[0, 0, 0] : f32 from vector<1x1x1xf32>
    %42 = arith.mulf %3, %23 : vector<8x1xf32>
    %43 = vector.shape_cast %42 : vector<8x1xf32> to vector<1x8x1xf32>
    %cst_12 = arith.constant dense<0.000000e+00> : vector<1xf32>
    %44 = vector.multi_reduction <add>, %43, %cst_12 [1, 2] : vector<1x8x1xf32> to vector<1xf32>
    %45 = vector.shape_cast %44 : vector<1xf32> to vector<1x1x1xf32>
    %46 = vector.extract %45[0, 0, 0] : f32 from vector<1x1x1xf32>
    %cst_13 = arith.constant 1.600000e+01 : f32
    %47 = arith.mulf %cst_13, %36 : f32
    %48 = arith.addf %27, %47 : f32
    %cst_14 = arith.constant 1.280000e+02 : f32
    %49 = arith.divf %48, %cst_14 : f32
    %cst_15 = arith.constant 2.000000e+00 : f32
    %50 = arith.mulf %cst_15, %46 : f32
    %51 = arith.addf %32, %50 : f32
    %cst_16 = arith.constant 1.600000e+01 : f32
    %52 = arith.mulf %cst_16, %41 : f32
    %53 = arith.addf %51, %52 : f32
    %cst_17 = arith.constant 1.280000e+02 : f32
    %54 = arith.divf %53, %cst_17 : f32
    %55 = arith.mulf %49, %49 : f32
    %56 = arith.subf %54, %55 : f32
    %cst_18 = arith.constant 9.99999993E-9 : f32
    %57 = arith.addf %56, %cst_18 : f32
    %58 = math.rsqrt %57 : f32
    %c0_19 = arith.constant 0 : index
    %c0_20 = arith.constant 0 : index
    %59 = vector.load %arg4[%c0_19, %c0_20] : memref<8x1xf32, #tpu.memory_space<vmem>>, vector<8x1xf32>
    %60 = vector.broadcast %58 : f32 to vector<8x1xf32>
    %61 = arith.mulf %59, %60 : vector<8x1xf32>
    %c0_21 = arith.constant 0 : index
    %c0_22 = arith.constant 0 : index
    %62 = vector.load %arg5[%c0_21, %c0_22] : memref<8x1xf32, #tpu.memory_space<vmem>>, vector<8x1xf32>
    %63 = vector.broadcast %49 : f32 to vector<8x1xf32>
    %64 = arith.subf %3, %63 : vector<8x1xf32>
    %65 = arith.mulf %61, %64 : vector<8x1xf32>
    %66 = arith.addf %62, %65 : vector<8x1xf32>
    %67 = vector.broadcast %61 : vector<8x1xf32> to vector<8x128xf32>
    %68 = arith.mulf %14, %67 : vector<8x128xf32>
    %69 = vector.broadcast %66 : vector<8x1xf32> to vector<8x128xf32>
    %70 = arith.addf %68, %69 : vector<8x128xf32>
    %c0_23 = arith.constant 0 : index
    %c0_24 = arith.constant 0 : index
    %c0_25 = arith.constant 0 : index
    %71 = vector.load %arg6[%c0_23, %c0_24, %c0_25] : memref<1x8x128xf32, #tpu.memory_space<vmem>>, vector<1x8x128xf32>
    %72 = vector.shape_cast %71 : vector<1x8x128xf32> to vector<8x128xf32>
    %73 = vector.shape_cast %70 : vector<8x128xf32> to vector<1x8x128xf32>
    tpu.vector_store %arg6[%c0_23, %c0_24, %c0_25], %73 {strides = array<i32>} : memref<1x8x128xf32, #tpu.memory_space<vmem>>, vector<1x8x128xf32>,
    return
  }
  func.func @transform_0(%arg0: i32) -> (i32, i32, i32) {
    %c0_i32 = arith.constant 0 : i32
    %c0_i32_0 = arith.constant 0 : i32
    %c0_i32_1 = arith.constant 0 : i32
    return %arg0, %c0_i32, %c0_i32_0 : i32, i32, i32
  }
  func.func @transform_1(%arg0: i32) -> (i32, i32) {
    %c0_i32 = arith.constant 0 : i32
    %c0_i32_0 = arith.constant 0 : i32
    %c0_i32_1 = arith.constant 0 : i32
    return %c0_i32, %c0_i32_0 : i32, i32
  }
  func.func @transform_2(%arg0: i32) -> (i32, i32) {
    %c0_i32 = arith.constant 0 : i32
    %c0_i32_0 = arith.constant 0 : i32
    %c0_i32_1 = arith.constant 0 : i32
    return %c0_i32, %c0_i32_0 : i32, i32
  }
  func.func @transform_3(%arg0: i32) -> (i32, i32) {
    %c0_i32 = arith.constant 0 : i32
    %c0_i32_0 = arith.constant 0 : i32
    %c0_i32_1 = arith.constant 0 : i32
    return %c0_i32, %c0_i32_0 : i32, i32
  }
  func.func @transform_4(%arg0: i32) -> (i32, i32) {
    %c0_i32 = arith.constant 0 : i32
    %c0_i32_0 = arith.constant 0 : i32
    %c0_i32_1 = arith.constant 0 : i32
    return %c0_i32, %c0_i32_0 : i32, i32
  }
  func.func @transform_5(%arg0: i32) -> (i32, i32, i32) {
    %c0_i32 = arith.constant 0 : i32
    %c0_i32_0 = arith.constant 0 : i32
    %c0_i32_1 = arith.constant 0 : i32
    return %arg0, %c0_i32, %c0_i32_0 : i32, i32, i32
  }
}

</mosaic_0001>

<bundles_post_ra>
// kernel: tpu_custom_call.1
= control target key start
LH: loop header
LB: loop body
LE: loop exit
PB: predicated region body
PF: predicated region fallthrough
CT: control target
= control target key end

     0   :  { %s975_s0 = inlined_call_operand.hbm [shape: f32[2,8,256], index: 0, kind: input, shape index: {}]   ;;  %s976_s1 = inlined_call_operand.vmem [shape: f32[8,40], index: 1, kind: input, shape index: {}]   ;;  %s977_s2 = inlined_call_operand.vmem [shape: f32[8,1], index: 2, kind: input, shape index: {}]   ;;  %s978_s3 = inlined_call_operand.vmem [shape: f32[8,1], index: 3, kind: input, shape index: {}]   ;;  %s979_s4 = inlined_call_operand.vmem [shape: f32[8,1], index: 4, kind: input, shape index: {}]   ;;  %s980_s5 = inlined_call_operand.hbm [shape: f32[2,8,128], index: 5, kind: output, shape index: {}]  }
   0x1   :  { %982 = sst [smem:[#allocation9_spill]] %s975_s0 }
   0x2   :  { %983 = sst [smem:[#allocation10_spill]] %s976_s1 }
   0x3   :  { %10 = vsyncpa [#allocation4], 0 }
   0x4   :  { %12 = vsyncpa [#allocation4 + $0x1], 0 }
   0x5   :  { %13 = vsyncpa [#allocation5], 0 }
   0x6   :  { %15 = vsyncpa [#allocation5 + $0x1], 0  ;;  %s790_s18 = smov 0   ;;  %s792_s19 = smov 0  }
   0x7   :  { %s794_s20 = smov 0   ;;  %s796_s21 = smov 0  }
   0x8 LB: > { %s811_s22 = sadd.s32 4294967295, %s748_s21   ;;  %s527_s23 = sadd.s32 4294967294, %s748_s21   ;;  %s748_s21 = sphi %s796_s21, %s999_s21   ;;  %s744_s20 = sphi %s794_s20, %s998_s20   ;;  %s740_s19 = sphi %s792_s19, %s997_s19   ;;  %s736_s18 = sphi %s790_s18, %s996_s18  }
   0x9   : > { %s815_s24 = sadd.s32 1, %s748_s21   ;;  %s28_s25 = sadd.s32 1, %s744_s20 }
   0xa   : > { %s25_s26 = ssub.s32 %s748_s21, %s815_s24  ;;  %p35_p0 = scmp.ne.s32.totalorder %s744_s20, %s740_s19 }
   0xb   : > { %p26_p1 = scmp.eq.s32.totalorder %s25_s26, 0  ;;  %p36_p2 = scmp.eq.s32.totalorder %s748_s21, 0 }
   0xc   : > { %p41_p3 = scmp.ne.s32.totalorder %s740_s19, %s736_s18  ;;  %p42_p4 = scmp.eq.s32.totalorder %s811_s22, 0 }
   0xd   : > { %s827_s27 = scalar_select %p26_p1, %s744_s20, %s28_s25  }
   0xe   : > { %p829_p5 = por %p36_p2, %p35_p0  ;;  %p833_p6 = por %p42_p4, %p41_p3 }
   0xf   : > { %p149_p7 = scmp.eq.s32.totalorder %s811_s22, 1  ;;  %p155_p8 = scmp.eq.s32.totalorder %s527_s23, 1 }
  0x10   : > { %p591_p10 = scmp.lt.s32.totalorder %s748_s21, 2  ;;  %s187_s7 = sand.u32 1, %s744_s20  }
  0x11   : > { %p840_p11 = por %p149_p7, %p35_p0  ;;  %p844_p12 = por %p155_p8, %p41_p3 }
  0x12   : > { %s541_s8 = sshll.u32 %s748_s21, 8  ;;  %s530_s9 = sshll.u32 %s187_s7, 4 }
  0x13   : > { %s986_s30 = scalar_select %p840_p11, 1, 0 }
  0x14   : > { %s987_s6 = scalar_select %p844_p12, 1, 0 }
  0x15   : > { %s988_s0 = sld [smem:[#allocation9_spill]]  ;;  %s191_s13 = scalar_lea.vmem [#allocation3], %s530_s9 }
  0x16   : > { %s199_s14 = sshll.u32 %s191_s13, 4  ;;  %p857_p13 = pnand %p591_p10, %p829_p5  ;;  %s861_s14 = int_to_ptr.vmem [resolvable:$true] %s199_s14 }
  0x17   : > { %s188_s16 = scalar_lea.sflag [#allocation4], %s187_s7 }
  0x18   : > { %p654_p3 = pneg %p857_p13 }
  0x1b   : > { %s853_s12 = scalar_lea.hbm %s988_s0, %s541_s8  ;;  %s657_s26 = scalar_lea.hbm %s988_s0, 512 }
  0x1c   : > { %s652_s17 = scalar_lea.hbm %s853_s12, 256  ;;  %p658_p5 = scmp.lt.u32.totalorder %s853_s12, %s988_s0 }
  0x1d   : > { %p653_p2 = scmp.ne.s32.totalorder %s853_s12, %s652_s17  ;;  %p659_p8 = scmp.lt.u32.totalorder %s657_s26, %s652_s17 }
  0x1e   : > { %p661_p9 = scmp.lt.u32.totalorder %s652_s17, %s853_s12 }
  0x1f   : > { %p655_p4 = pnand %p654_p3, %p653_p2  ;;  %p660_p10 = por %p659_p8, %p658_p5 }
  0x21   : > { %p656_p7 = pneg %p655_p4  ;;  %p662_p0 = por %p661_p9, %p660_p10 }
  0x23   : > { %p663_p1 = pnand %p662_p0, %p656_p7 }
  0x25   : > { %666 = shalt.err (!%p663_p1)
}
  0x26   : > { %s667_s7 = scalar_lea.vmem %s861_s14, 256  ;;  %s750_s9 = smov [#allocation3]  }
  0x27   : > { %p668_p2 = scmp.ne.s32.totalorder %s861_s14, %s667_s7  ;;  %s672_s10 = sshll.u32 %s750_s9, 4  ;;  %s673_s10 = int_to_ptr.vmem [resolvable:$false] %s672_s10 }
  0x28   : > { %s674_s11 = scalar_lea.vmem %s673_s10, 512  ;;  %p675_p11 = scmp.lt.s32.totalorder %s861_s14, %s673_s10 }
  0x29   : > { %p670_p4 = pnand %p668_p2, %p654_p3  ;;  %p676_p5 = scmp.lt.s32.totalorder %s674_s11, %s667_s7 }
  0x2b   : > { %p671_p12 = pneg %p670_p4  ;;  %p677_p8 = por %p676_p5, %p675_p11 }
  0x2d   : > { %p678_p9 = pnand %p677_p8, %p671_p12 }
  0x2f   : > { %681 = shalt.err (!%p678_p9)
}
  0x30   : > { %586 = dma.hbm_to_vmem [thread:$0]  (!%p857_p13), %s853_s12, 256, %s861_s14, %s188_s16  }
  0x31   : > { %p990_p0 = scmp.lt.s32.totalorder %s748_s21, 3  ;;  %p991_p1 = scmp.ge.s32.totalorder %s748_s21, 1 }
  0x33   : > { %p205_p3 = pnand %p991_p1, %p990_p0 }
  0x34   : > { %s895_s13 = sand.u32 (!%p205_p3), 1, %s740_s19  }
  0x35   : > { %208 = sbr.rel (%p205_p3) target bundleno = 983 (0x3d7), region = 40  ;;  %s534_s17 = sshll.u32 (!%p205_p3), %s895_s13, 4 }
  0x36   : > { %s211_s23 = scalar_lea.sflag (!%p205_p3), [#allocation4], %s895_s13  ;;  %s214_s25 = scalar_lea.vmem (!%p205_p3), [#allocation3], %s534_s17 }
  0x3c   : > { %727 = dma.done.wait (%p833_p6), %s211_s23, 256  }
  0x3d   : > { %729 = vsyncadd (%p833_p6), %s211_s23, 4294967040  ;;  %v751_v0 = vmov 0.0|0.0   ;;  %v241_v1 = vld [vmem:[%s214_s25] sm:$0xff]  ;;  %v242_v2 = vld [vmem:[%s214_s25 + $0x8] sm:$0xff]  ;;  %s752_s12 = smov 126   ;;  %s753_s14 = smov 122   ;;  %v249_v5 = vlaneseq }
  0x3e   : > { %561 = vmatprep.subr.bf16.mxu0 %v751_v0  ;;  %v633_v3 = vpack.i.bf16 %v242_v2, %v241_v1  ;;  %vm754_vm0 = vmmov 0   ;;  %v755_v4 = vmov 0.0   ;;  %s756_s15 = smov 124   ;;  %s757_s16 = smov 120   ;;  %vm271_vm5 = vcmask 326656   ;;  %v911_v26 = vld [vmem:[%s977_s2] sm:$0xff] }
  0x3f   : > { %558 = vmatprep.mubr.msk.f32.mxu0 %vm754_vm0, %v755_v4  ;;  %v250_v6 = vand.u32 127, %v249_v5  ;;  %s992_s1 = sld [smem:[#allocation10_spill]]  ;;  %vm351_vm7 = vcmask 7168   ;;  %v382_v31 = vmul.f32 %v911_v26, %v911_v26  ;;  %p993_p11 = scmp.ne.s32.totalorder %s986_s30, 0 }
  0x40   : > { %634 = vrot.lane.b32.xlu0 %v633_v3, %s752_s12  ;;  %644 = vrot.lane.b32.xlu1 %v633_v3, %s753_s14  ;;  %v372_v30 = vsel %vm351_vm7, %v911_v26, 0.0 }
  0x41   : > { %vm251_vm1 = vcmp.lt.s32.totalorder %v250_v6, 126  ;;  %vm263_vm2 = vcmp.lt.s32.totalorder %v250_v6, 122  ;;  %vm257_vm3 = vcmp.lt.s32.totalorder %v250_v6, 124  ;;  %vm269_vm4 = vcmp.lt.s32.totalorder %v250_v6, 120 }
  0x42   : > { %vm345_vm6 = vcmp.lt.s32.totalorder %v250_v6, 16  ;;  %v383_v36 = vsel %vm351_vm7, %v382_v31, 0.0 }
  0x44   : > { %639 = vrot.lane.b32.xlu0 %v633_v3, %s756_s15  ;;  %265 = vrot.lane.b32.xlu1 %v241_v1, %s757_s16 }
  0x45   : > { %v243_v24 = vld [vmem:[%s992_s1] sm:$0xff] }
  0x48   : > { %267 = vrot.lane.b32.xlu0 %v242_v2, %s757_s16 }
  0xb2   : > { %v635_v7 = vpop.permute.xlu0 %634  ;;  %v645_v8 = vpop.permute.xlu1 %644 }
  0xb3   : > { %v637_v9 = vunpack.i.h.bf16 %v635_v7  ;;  %v636_v10 = vunpack.i.l.bf16 %v635_v7  ;;  %v647_v11 = vunpack.i.h.bf16 %v645_v8  ;;  %v646_v12 = vunpack.i.l.bf16 %v645_v8 }
  0xb4   : > { %v758_v8 = vmov 0  }
  0xb5   : > { %v252_v13 = vsel %vm251_vm1, %v636_v10, %v637_v9  ;;  %v264_v18 = vsel %vm263_vm2, %v646_v12, %v647_v11  ;;  %648 = vset.pattern.permute.xlu0 %v758_v8  ;;  %649 = vset.pattern.permute.xlu1 %v758_v8  ;;  %v422_v12 = vld [vmem:[%s978_s3] sm:$0xff] }
  0xb6   : > { %v640_v14 = vpop.permute.xlu0 %639  ;;  %v562_v15 = vpack.c.bf16 %v252_v13, %v241_v1  ;;  %v266_v21 = vpop.permute.xlu1 %265 }
  0xb7   : > { %v642_v16 = vunpack.i.h.bf16 %v640_v14  ;;  %v641_v17 = vunpack.i.l.bf16 %v640_v14 }
  0xb8   : > { %563 = vmatpush3.bf16.msra.mxu0 %v562_v15 }
  0xb9   : > { %564 = vmatprep.subr.bf16.mxu0 %v751_v0  ;;  %v258_v19 = vsel %vm257_vm3, %v641_v17, %v642_v16  ;;  %v425_v16 = vld [vmem:[%s979_s4] sm:$0xff] }
  0xba   : > { %v565_v20 = vpack.c.bf16 %v264_v18, %v258_v19  ;;  %v268_v22 = vpop.permute.xlu0 %267 }
  0xbb   : > { %v270_v23 = vsel %vm269_vm4, %v266_v21, %v268_v22 }
  0xbc   : > { %566 = vmatpush3.bf16.msra.mxu0 %v565_v20 }
  0xbd   : > { %556 = vmatprep.subr.mxu0 %v755_v4 }
  0xc0   : > { %557 = vmatpush3.msra.mxu0 %v270_v23 }
  0xc1   : > { %559 = vmatmul.mubr.msk.f32.vlgmr.msra.gmra.mrb[0].mxu0 %vm271_vm5, %v243_v24 }
 0x194   : > { %v906_v25 = vpop.f32.mrb[0].mxu0 }
 0x195   : > { %v560_v27 = vpop.f32.mrb[1].mxu0  ;;  %v348_v28 = vsel %vm345_vm6, %v906_v25, 0.0 }
 0x196   : > { %349 = vadd.xlane.f32.xlu1 %v348_v28  ;;  %v362_v29 = vmul.f32 %v348_v28, %v348_v28 }
 0x198   : > { %363 = vadd.xlane.f32.xlu0 %v362_v29 }
 0x19a   : > { %373 = vadd.xlane.f32.xlu1 %v372_v30 }
 0x223   : > { %v350_v32 = vpop.xlane.xlu1 %349 }
 0x224   : > { %v393_v33 = vmul.f32 %v350_v32, %v911_v26  ;;  %v352_v34 = vsel %vm351_vm7, %v350_v32, 0.0 }
 0x225   : > { %353 = vadd.xlane.f32.xlu0 %v352_v34  ;;  %v364_v37 = vpop.xlane.xlu0 %363 }
 0x226   : > { %v394_v35 = vsel %vm351_vm7, %v393_v33, 0.0  ;;  %v365_v39 = vrot.slane %v364_v37, 4 }
 0x227   : > { %395 = vadd.xlane.f32.xlu1 %v394_v35  ;;  %v374_v38 = vpop.xlane.xlu1 %373 }
 0x228   : > { %v375_v40 = vrot.slane %v374_v38, 4  ;;  %v366_v41 = vadd.f32 %v365_v39, %v364_v37 }
 0x229   : > { %384 = vadd.xlane.f32.xlu0 %v383_v36 }
 0x22a   : > { %v376_v42 = vadd.f32 %v375_v40, %v374_v38  ;;  %v367_v43 = vrot.slane %v366_v41, 2 }
 0x22c   : > { %v377_v45 = vrot.slane %v376_v42, 2  ;;  %v368_v51 = vadd.f32 %v367_v43, %v366_v41 }
 0x22e   : > { %v378_v55 = vadd.f32 %v377_v45, %v376_v42  ;;  %v369_v59 = vrot.slane %v368_v51, 1 }
 0x230   : > { %v379_v62 = vrot.slane %v378_v55, 1  ;;  %v370_v2 = vadd.f32 %v369_v59, %v368_v51 }
 0x232   : > { %v380_v4 = vadd.f32 %v379_v62, %v378_v55 }
 0x2b2   : > { %v354_v44 = vpop.xlane.xlu0 %353 }
 0x2b3   : > { %v355_v46 = vrot.slane %v354_v44, 4 }
 0x2b4   : > { %v396_v47 = vpop.xlane.xlu1 %395 }
 0x2b5   : > { %v356_v48 = vadd.f32 %v355_v46, %v354_v44  ;;  %v397_v49 = vrot.slane %v396_v47, 4 }
 0x2b6   : > { %v385_v50 = vpop.xlane.xlu0 %384 }
 0x2b7   : > { %v357_v52 = vrot.slane %v356_v48, 2  ;;  %v398_v53 = vadd.f32 %v397_v49, %v396_v47  ;;  %v386_v54 = vrot.slane %v385_v50, 4 }
 0x2b9   : > { %v399_v56 = vrot.slane %v398_v53, 2  ;;  %v387_v57 = vadd.f32 %v386_v54, %v385_v50  ;;  %v358_v58 = vadd.f32 %v357_v52, %v356_v48 }
 0x2bb   : > { %v388_v60 = vrot.slane %v387_v57, 2  ;;  %v359_v61 = vrot.slane %v358_v58, 1  ;;  %v400_v63 = vadd.f32 %v399_v56, %v398_v53 }
 0x2bd   : > { %v360_v0 = vadd.f32 %v359_v61, %v358_v58  ;;  %v389_v1 = vadd.f32 %v388_v60, %v387_v57  ;;  %v401_v3 = vrot.slane %v400_v63, 1 }
 0x2bf   : > { %567 = vpush %v360_v0  ;;  %v390_v5 = vrot.slane %v389_v1, 1  ;;  %v402_v7 = vadd.f32 %v401_v3, %v400_v63 }
 0x2c0   : > { %569 = vpush %v370_v2 }
 0x2c1   : > { %571 = vpush %v380_v4  ;;  %v391_v6 = vadd.f32 %v390_v5, %v389_v1 }
 0x2c3   : > { %573 = vpush %v391_v6 }
 0x2c4   : > { %575 = vpush %v402_v7 }
 0x2f0   : > { %s568_s7 = spop %567 }
 0x2f1   : > { %s570_s9 = spop %569 }
 0x2f2   : > { %s572_s10 = spop %571 }
 0x2f3   : > { %s404_s11 = smul.f32 16.0, %s572_s10 }
 0x2f4   : > { %s574_s17 = spop %573 }
 0x2f5   : > { %s405_s23 = sadd.f32 %s568_s7, %s404_s11  ;;  %s576_s25 = spop %575 }
 0x2f6   : > { %s409_s12 = smul.f32 2.0, %s576_s25 }
 0x2f7   : > { %s408_s14 = smul.f32 0.0078125, %s405_s23 }
 0x2f8   : > { %s411_s15 = smul.f32 16.0, %s574_s17  ;;  %s410_s16 = sadd.f32 %s570_s9, %s409_s12 }
 0x2f9   : > { %s416_s26 = smul.f32 %s408_s14, %s408_s14  ;;  %v426_v11 = vstv %s408_s14  ;;  %s538_s17 = sshll.u32 %s811_s22, 7 }
 0x2fa   : > { %s412_s29 = sadd.f32 %s411_s15, %s410_s16  ;;  %v427_v15 = vsub.f32 %v911_v26, %v426_v11  ;;  %s931_s14 = scalar_lea.hbm %s980_s5, %s538_s17 }
 0x2fb   : > { %s444_s15 = scalar_lea.sflag [#allocation5], %s895_s13  ;;  %s759_s22 = smov [#allocation6]  }
 0x2fc   : > { %s415_s28 = smul.f32 0.0078125, %s412_s29  ;;  %s686_s29 = sshll.u32 %s759_s22, 4  ;;  %s687_s29 = int_to_ptr.vmem [resolvable:$false] %s686_s29 }
 0x2fe   : > { %s417_s8 = ssub.f32 %s415_s28, %s416_s26  ;;  %s688_s26 = scalar_lea.vmem %s687_s29, 256 }
 0x300   : > { %s418_s0 = sadd.f32 1e-08, %s417_s8 }
 0x302   : > { %v419_v9 = vstv %s418_s0  ;;  %s535_s0 = sshll.u32 %s895_s13, 3 }
 0x303   : > { %650 = vrsqrt.f32 %v419_v9  ;;  %s240_s1 = scalar_lea.vmem [#allocation6], %s535_s0 }
 0x304   : > { %s457_s23 = sshll.u32 %s240_s1, 4  ;;  %s933_s23 = int_to_ptr.vmem [resolvable:$true] %s457_s23 }
 0x305   : > { %s682_s16 = scalar_lea.vmem %s933_s23, 128  ;;  %p689_p7 = scmp.lt.s32.totalorder %s933_s23, %s687_s29 }
 0x306   : > { %p683_p6 = scmp.ne.s32.totalorder %s933_s23, %s682_s16  ;;  %p690_p10 = scmp.lt.s32.totalorder %s688_s26, %s682_s16 }
 0x308   : > { %p684_p12 = pnand %p683_p6, %p993_p11  ;;  %p691_p2 = por %p690_p10, %p689_p7 }
 0x30a   : > { %p685_p13 = pneg %p684_p12 }
 0x30c   : > { %p692_p4 = pnand %p691_p2, %p685_p13 }
 0x30d   : > { %v651_v10 = vpop.eup %650 }
 0x30e   : > { %577 = vpush %v651_v10 }
 0x33f   : > { %s578_s7 = spop %577 }
 0x340   : > { %v423_v13 = vstv %s578_s7 }
 0x341   : > { %v424_v14 = vmul.f32 %v423_v13, %v422_v12 }
 0x343   : > { %v428_v17 = vmul.f32 %v427_v15, %v424_v14  ;;  %432 = vperm.xlu0 %648, %v424_v14  }
 0x345   : > { %v429_v18 = vadd.f32 %v428_v17, %v425_v16 }
 0x347   : > { %438 = vperm.xlu1 %649, %v429_v18  }
 0x3c2   : > { %v433_v19 = vpop.permute.xlu0 %432 }
 0x3c3   : > { %v435_v20 = vmul.f32 %v433_v19, %v906_v25 }
 0x3c6   : > { %v439_v21 = vpop.permute.xlu1 %438 }
 0x3c7   : > { %v441_v22 = vadd.f32 %v439_v21, %v435_v20 }
 0x3c9   : > { %442 = vst [vmem:[%s240_s1] sm:$0xff] %v441_v22 }
 0x3ca   : > { %695 = shalt.err (!%p692_p4)
}
 0x3cb   : > { %s696_s13 = scalar_lea.hbm %s931_s14, 128  ;;  %s700_s10 = scalar_lea.hbm %s980_s5, 256 }
 0x3cc   : > { %p697_p5 = scmp.ne.s32.totalorder %s931_s14, %s696_s13  ;;  %p701_p0 = scmp.lt.u32.totalorder %s931_s14, %s980_s5 }
 0x3cd   : > { %p702_p1 = scmp.lt.u32.totalorder %s700_s10, %s696_s13  ;;  %p704_p6 = scmp.lt.u32.totalorder %s696_s13, %s931_s14 }
 0x3ce   : > { %p698_p8 = pnand %p697_p5, %p993_p11 }
 0x3cf   : > { %p703_p3 = por %p702_p1, %p701_p0 }
 0x3d0   : > { %p699_p9 = pneg %p698_p8 }
 0x3d1   : > { %p705_p12 = por %p704_p6, %p703_p3 }
 0x3d3   : > { %p706_p13 = pnand %p705_p12, %p699_p9 }
 0x3d5   : > { %709 = shalt.err (!%p706_p13)
}
 0x3d6   : > { %581 = dma.vmem_to_hbm [thread:$0]  (%p993_p11), %s933_s23, 128, %s931_s14, %s444_s15  }
 0x3d7 PF: > { %s469_s11 = sand.u32 1, %s736_s18   ;;  %p994_p7 = scmp.ne.s32.totalorder %s987_s6, 0 }
 0x3d8   : > { %p995_p10 = scmp.ge.s32.totalorder %s748_s21, 2  ;;  %s470_s0 = scalar_lea.sflag [#allocation5], %s469_s11 }
 0x3da   : > { %p588_p2 = pnand %p995_p10, %p994_p7 }
 0x3dc   : > { %731 = dma.done.wait (!%p588_p2), %s470_s0, 128  }
 0x3dd   : > { %733 = vsyncadd (!%p588_p2), %s470_s0, 4294967168  ;;  %p18_p4 = scmp.ge.s32.totalorder %s815_s24, 4   ;;  %s996_s18 = smov %s740_s19 }
 0x3de   : > { %s997_s19 = smov %s744_s20  ;;  %s998_s20 = smov %s827_s27 }
 0x3df   : > { %s999_s21 = smov %s815_s24  ;;  %20 = sbr.rel (!%p18_p4) target bundleno = 8 (0x8), region = 85 }
 0x3e6   :  { %475 = vsyncpa [#allocation4], 1 }
 0x3e7   :  { %477 = vsyncpa [#allocation4 + $0x1], 1 }
 0x3e8   :  { %478 = vsyncpa [#allocation5], 1 }
 0x3e9   :  { %480 = vsyncpa [#allocation5 + $0x1], 1 }

</bundles_post_ra>
